<compile_context>
chip_gen: v5e
topology: v5e:2x2
jax: 0.10.0
libtpu: 0.0.40
codegen_flags: <defaults>
</compile_context>

<pallas_src>
import jax
import jax.numpy as jnp
from jax.experimental import pallas as pl
from jax.experimental.pallas import tpu as pltpu

# ---------------------------------------------------------------------------
# "hparams" (synthetic, deterministic)
# ---------------------------------------------------------------------------
CODES_DIM = 320                       # codes_dim default from the module
HIDDEN_DIMS = [64, 64]                # hparams.clusternet_hidden_layer_list
K = 10                                # hparams.init_k
SOFTMAX_NORM = 1.0                    # hparams.softmax_norm

KP = 128                              # lane-padded classifier head width (VMEM only)
NEG_BIG = -1e30                       # padded-logit bias -> exp() underflows to 0


def _round_up(x, m):
    return (x + m - 1) // m * m


# ---------------------------------------------------------------------------
# kernel
# ---------------------------------------------------------------------------
def _mlp_kernel(x_ref, w1_ref, b1_ref, wh_ref, bh_ref, w2_ref, b2_ref, o_ref):
    # x stays f32 in HBM; cast the VMEM tile to bf16 at point of use so the
    # wrapper does no extra full-array pass.
    x = x_ref[...].astype(jnp.bfloat16)
    # fc1 + ReLU  (bf16 MXU operands, f32 accumulate / bias / ReLU)
    h = jnp.dot(x, w1_ref[...], preferred_element_type=jnp.float32)
    h = jnp.maximum(h + b1_ref[...], 0.0)
    # hidden layer (Linear + ReLU) -- HIDDEN_DIMS = [64, 64] -> one hidden Linear
    h = jnp.dot(h.astype(wh_ref.dtype), wh_ref[...],
                preferred_element_type=jnp.float32)
    h = jnp.maximum(h + bh_ref[...], 0.0)
    # fc2 (softmax_norm folded into w2/b2; padded lanes carry a -1e30 f32 bias
    # so they contribute exactly 0 to the softmax denominator)
    logits = jnp.dot(h.astype(w2_ref.dtype), w2_ref[...],
                     preferred_element_type=jnp.float32) + b2_ref[...]
    # numerically stable softmax over the 128-wide (VMEM-only) class axis
    m = jnp.max(logits, axis=1, keepdims=True)
    e = jnp.exp(logits - m)
    denom = jnp.sum(e, axis=1, keepdims=True)
    inv = pl.reciprocal(denom, approx=False)   # exact normalization, negligible cost
    k = o_ref.shape[1]                          # only the K real classes hit HBM
    o_ref[...] = (e[:, :k] * inv).astype(o_ref.dtype)


# ---------------------------------------------------------------------------
# one-time (cold path) parameter prep
# ---------------------------------------------------------------------------
def prepare_params(params, *, softmax_norm=SOFTMAX_NORM):
    """Fold softmax_norm into fc2, lane-pad the head K -> KP, cast weights to bf16.

    Do this once; reuse the result for every forward call."""
    w1, b1, wh, bh, w2, b2 = params
    k = w2.shape[1]
    assert k <= KP
    # Padded weight columns are zero; padded bias columns are -1e30 (kept f32
    # inside the kernel) so softmax assigns them exactly zero probability.
    w2p = jnp.zeros((w2.shape[0], KP), jnp.float32).at[:, :k].set(w2 * softmax_norm)
    b2p = jnp.full((1, KP), NEG_BIG, jnp.float32).at[:, :k].set(
        b2.reshape(-1) * softmax_norm)
    return dict(
        w1=w1.astype(jnp.bfloat16), b1=b1.astype(jnp.float32),
        wh=wh.astype(jnp.bfloat16), bh=bh.astype(jnp.float32),
        w2=w2p.astype(jnp.bfloat16), b2=b2p, k=k)


# ---------------------------------------------------------------------------
# forward wrapper
# ---------------------------------------------------------------------------
def mlp_classifier_forward(x, prepped, *, tb=2048, num_cores=1):
    """x: any shape whose trailing flatten gives [-1, CODES_DIM].

    num_cores: 1 for v5e/v6e (single TensorCore); pass 2 on v7x so small
    batches are split into an even, load-balanced grid across the two TCs."""
    x = x.reshape(-1, CODES_DIM)                      # x.view(-1, codes_dim)
    n = x.shape[0]

    k = prepped["k"]
    w1b, b1 = prepped["w1"], prepped["b1"]
    whb, bh = prepped["wh"], prepped["bh"]
    w2b, b2p = prepped["w2"], prepped["b2"]

    # ---- batch tiling (no jnp.pad: tail block is a Pallas partial block) ----
    tb_eff = min(_round_up(tb, 8), _round_up(n, 8))
    grid = pl.cdiv(n, tb_eff)
    if num_cores >= 2:
        # v7x: keep both TensorCores busy with an even number of grid steps.
        if grid < num_cores and n >= 8 * num_cores:
            tb_eff = _round_up(pl.cdiv(n, num_cores), 8)
            grid = pl.cdiv(n, tb_eff)
        elif grid > 1 and grid % num_cores != 0:
            tb_eff = _round_up(pl.cdiv(n, _round_up(grid, num_cores)), 8)
            grid = pl.cdiv(n, tb_eff)

    def full(arr):
        nd = arr.ndim
        return pl.BlockSpec(arr.shape, lambda i, _nd=nd: (0,) * _nd)

    flops = 2 * n * (CODES_DIM * HIDDEN_DIMS[0]
                     + HIDDEN_DIMS[0] * HIDDEN_DIMS[1]
                     + HIDDEN_DIMS[-1] * KP)
    bytes_accessed = (n * (CODES_DIM * 4 + k * 4)                # x in, probs out
                      + 2 * (w1b.size + whb.size + w2b.size)     # bf16 weights
                      + 4 * (b1.size + bh.size + b2p.size))      # f32 biases

    out = pl.pallas_call(
        _mlp_kernel,
        out_shape=jax.ShapeDtypeStruct((n, k), jnp.float32),
        grid_spec=pltpu.PrefetchScalarGridSpec(
            num_scalar_prefetch=0,
            grid=(grid,),
            in_specs=[
                pl.BlockSpec((tb_eff, CODES_DIM), lambda i: (i, 0)),  # x tile (f32)
                full(w1b), full(b1),                                  # fc1
                full(whb), full(bh),                                  # hidden
                full(w2b), full(b2p),                                 # fc2 (padded)
            ],
            out_specs=pl.BlockSpec((tb_eff, k), lambda i: (i, 0)),    # K-narrow out
        ),
        compiler_params=pltpu.CompilerParams(
            dimension_semantics=("parallel",)),
        cost_estimate=pl.CostEstimate(
            flops=flops,
            transcendentals=n * KP,
            bytes_accessed=bytes_accessed),
    )(x, w1b, b1, whb, bh, w2b, b2p)
    return out


# ---------------------------------------------------------------------------
# synthetic params + pure-JAX reference
# ---------------------------------------------------------------------------
def init_params(key):
    """Deterministic synthetic parameters (PyTorch-Linear-like uniform init)."""
    ks = jax.random.split(key, 6)

    def linear(kw, kb, fan_in, fan_out):
        bound = 1.0 / jnp.sqrt(fan_in)
        w = jax.random.uniform(kw, (fan_in, fan_out), jnp.float32, -bound, bound)
        b = jax.random.uniform(kb, (1, fan_out), jnp.float32, -bound, bound)
        return w, b

    w1, b1 = linear(ks[0], ks[1], CODES_DIM, HIDDEN_DIMS[0])
    wh, bh = linear(ks[2], ks[3], HIDDEN_DIMS[0], HIDDEN_DIMS[1])
    w2, b2 = linear(ks[4], ks[5], HIDDEN_DIMS[1], K)
    return (w1, b1, wh, bh, w2, b2)


def reference_forward(x, params, softmax_norm=SOFTMAX_NORM):
    w1, b1, wh, bh, w2, b2 = params
    h = jnp.maximum(x.reshape(-1, CODES_DIM) @ w1 + b1, 0.0)
    h = jnp.maximum(h @ wh + bh, 0.0)
    logits = (h @ w2 + b2) * softmax_norm
    return jax.nn.softmax(logits, axis=1)


# TODO(synk): update_K_split / update_K_merge are host-side parameter surgery
# (not part of forward); they are intentionally not implemented as kernels.

if __name__ == "__main__":
    key = jax.random.PRNGKey(0)
    kx, kp, kx2 = jax.random.split(key, 3)

    params = init_params(kp)
    prepped = prepare_params(params)          # one-time weight prep

    # input: [16, 320]  (view(-1, codes_dim) is identity here)
    x = jax.random.normal(kx, (16, CODES_DIM), jnp.float32)
    out = jax.block_until_ready(mlp_classifier_forward(x, prepped))
    ref = reference_forward(x, params)
    assert out.shape == (16, K)
    # bf16 matmul operands -> loosened tolerance; softmax itself is exact f32
    assert jnp.allclose(out, ref, atol=2e-2, rtol=2e-2)
    assert jnp.allclose(jnp.sum(out, axis=1), 1.0, atol=1e-3)

    # exercise the multi-tile + partial-last-block path (n not a tile multiple)
    x2 = jax.random.normal(kx2, (20, CODES_DIM), jnp.float32)
    out2 = jax.block_until_ready(mlp_classifier_forward(x2, prepped, tb=8))
    ref2 = reference_forward(x2, params)
    assert out2.shape == (20, K)
    assert jnp.allclose(out2, ref2, atol=2e-2, rtol=2e-2)

    print("KERNEL_OK")
</pallas_src>

<mosaic_0001>
module attributes {stable_mosaic.version = 11 : i64} {
  func.func @_mlp_kernel(%arg0: i32, %arg1: memref<16x320xf32, #tpu.memory_space<vmem>>, %arg2: memref<320x64xbf16, #tpu.memory_space<vmem>>, %arg3: memref<1x64xf32, #tpu.memory_space<vmem>>, %arg4: memref<64x64xbf16, #tpu.memory_space<vmem>>, %arg5: memref<1x64xf32, #tpu.memory_space<vmem>>, %arg6: memref<64x128xbf16, #tpu.memory_space<vmem>>, %arg7: memref<1x128xf32, #tpu.memory_space<vmem>>, %arg8: memref<16x10xf32, #tpu.memory_space<vmem>>) attributes {dimension_semantics = [#tpu.dimension_semantics<parallel>], iteration_bounds = array<i64: 1>, scalar_prefetch = 0 : i64, scratch_operands = 0 : i64, tpu.core_type = #tpu.core_type<tc>, window_params = [{transform_indices = @transform_0, window_bounds = array<i64: 16, 320>}, {pipeline_mode = #tpu.pipeline_mode<synchronous>, transform_indices = @transform_1, window_bounds = array<i64: 320, 64>}, {pipeline_mode = #tpu.pipeline_mode<synchronous>, transform_indices = @transform_2, window_bounds = array<i64: 1, 64>}, {pipeline_mode = #tpu.pipeline_mode<synchronous>, transform_indices = @transform_3, window_bounds = array<i64: 64, 64>}, {pipeline_mode = #tpu.pipeline_mode<synchronous>, transform_indices = @transform_4, window_bounds = array<i64: 1, 64>}, {pipeline_mode = #tpu.pipeline_mode<synchronous>, transform_indices = @transform_5, window_bounds = array<i64: 64, 128>}, {pipeline_mode = #tpu.pipeline_mode<synchronous>, transform_indices = @transform_6, window_bounds = array<i64: 1, 128>}, {transform_indices = @transform_7, window_bounds = array<i64: 16, 10>}]} {
    %c0 = arith.constant 0 : index
    %c0_0 = arith.constant 0 : index
    %0 = vector.load %arg1[%c0, %c0_0] : memref<16x320xf32, #tpu.memory_space<vmem>>, vector<16x320xf32>
    %1 = arith.truncf %0 : vector<16x320xf32> to vector<16x320xbf16>
    %c0_1 = arith.constant 0 : index
    %c0_2 = arith.constant 0 : index
    %2 = vector.load %arg2[%c0_1, %c0_2] : memref<320x64xbf16, #tpu.memory_space<vmem>>, vector<320x64xbf16>
    %cst = arith.constant dense<0.000000e+00> : vector<16x64xf32>
    %3 = tpu.matmul %1, %2, %cst {dimension_numbers = #tpu.dot_dimension_numbers<[1], [0], [0], [1], [0, 0, 1, 1], [], []>} : vector<16x320xbf16>, vector<320x64xbf16>, vector<16x64xf32> -> vector<16x64xf32>
    %c0_3 = arith.constant 0 : index
    %c0_4 = arith.constant 0 : index
    %4 = vector.load %arg3[%c0_3, %c0_4] : memref<1x64xf32, #tpu.memory_space<vmem>>, vector<1x64xf32>
    %5 = vector.broadcast %4 : vector<1x64xf32> to vector<16x64xf32>
    %6 = arith.addf %3, %5 : vector<16x64xf32>
    %cst_5 = arith.constant 0.000000e+00 : f32
    %7 = vector.broadcast %cst_5 : f32 to vector<16x64xf32>
    %8 = arith.maximumf %6, %7 : vector<16x64xf32>
    %9 = arith.truncf %8 : vector<16x64xf32> to vector<16x64xbf16>
    %c0_6 = arith.constant 0 : index
    %c0_7 = arith.constant 0 : index
    %10 = vector.load %arg4[%c0_6, %c0_7] : memref<64x64xbf16, #tpu.memory_space<vmem>>, vector<64x64xbf16>
    %cst_8 = arith.constant dense<0.000000e+00> : vector<16x64xf32>
    %11 = tpu.matmul %9, %10, %cst_8 {dimension_numbers = #tpu.dot_dimension_numbers<[1], [0], [0], [1], [0, 0, 1, 1], [], []>} : vector<16x64xbf16>, vector<64x64xbf16>, vector<16x64xf32> -> vector<16x64xf32>
    %c0_9 = arith.constant 0 : index
    %c0_10 = arith.constant 0 : index
    %12 = vector.load %arg5[%c0_9, %c0_10] : memref<1x64xf32, #tpu.memory_space<vmem>>, vector<1x64xf32>
    %13 = vector.broadcast %12 : vector<1x64xf32> to vector<16x64xf32>
    %14 = arith.addf %11, %13 : vector<16x64xf32>
    %cst_11 = arith.constant 0.000000e+00 : f32
    %15 = vector.broadcast %cst_11 : f32 to vector<16x64xf32>
    %16 = arith.maximumf %14, %15 : vector<16x64xf32>
    %17 = arith.truncf %16 : vector<16x64xf32> to vector<16x64xbf16>
    %c0_12 = arith.constant 0 : index
    %c0_13 = arith.constant 0 : index
    %18 = vector.load %arg6[%c0_12, %c0_13] : memref<64x128xbf16, #tpu.memory_space<vmem>>, vector<64x128xbf16>
    %cst_14 = arith.constant dense<0.000000e+00> : vector<16x128xf32>
    %19 = tpu.matmul %17, %18, %cst_14 {dimension_numbers = #tpu.dot_dimension_numbers<[1], [0], [0], [1], [0, 0, 1, 1], [], []>} : vector<16x64xbf16>, vector<64x128xbf16>, vector<16x128xf32> -> vector<16x128xf32>
    %c0_15 = arith.constant 0 : index
    %c0_16 = arith.constant 0 : index
    %20 = vector.load %arg7[%c0_15, %c0_16] : memref<1x128xf32, #tpu.memory_space<vmem>>, vector<1x128xf32>
    %21 = vector.broadcast %20 : vector<1x128xf32> to vector<16x128xf32>
    %22 = arith.addf %19, %21 : vector<16x128xf32>
    %cst_17 = arith.constant dense<0xFF800000> : vector<16xf32>
    %23 = vector.multi_reduction <maximumf>, %22, %cst_17 [1] : vector<16x128xf32> to vector<16xf32>
    %24 = vector.shape_cast %23 : vector<16xf32> to vector<16x1xf32>
    %25 = vector.broadcast %24 : vector<16x1xf32> to vector<16x128xf32>
    %26 = arith.subf %22, %25 : vector<16x128xf32>
    %27 = math.exp %26 : vector<16x128xf32>
    %cst_18 = arith.constant dense<0.000000e+00> : vector<16xf32>
    %28 = vector.multi_reduction <add>, %27, %cst_18 [1] : vector<16x128xf32> to vector<16xf32>
    %29 = vector.shape_cast %28 : vector<16xf32> to vector<16x1xf32>
    %30 = tpu.reciprocal %29 : vector<16x1xf32> -> vector<16x1xf32>
    %31 = vector.extract_strided_slice %27 {offsets = [0, 0], sizes = [16, 10], strides = [1, 1]} : vector<16x128xf32> to vector<16x10xf32>
    %32 = vector.broadcast %30 : vector<16x1xf32> to vector<16x10xf32>
    %33 = arith.mulf %31, %32 : vector<16x10xf32>
    %c0_19 = arith.constant 0 : index
    %c0_20 = arith.constant 0 : index
    %34 = vector.load %arg8[%c0_19, %c0_20] : memref<16x10xf32, #tpu.memory_space<vmem>>, vector<16x10xf32>
    tpu.vector_store %arg8[%c0_19, %c0_20], %33 {strides = array<i32>} : memref<16x10xf32, #tpu.memory_space<vmem>>, vector<16x10xf32>,
    return
  }
  func.func @transform_0(%arg0: i32) -> (i32, i32) {
    %c0_i32 = arith.constant 0 : i32
    %c0_i32_0 = arith.constant 0 : i32
    return %arg0, %c0_i32 : i32, i32
  }
  func.func @transform_1(%arg0: i32) -> (i32, i32) {
    %c0_i32 = arith.constant 0 : i32
    %c0_i32_0 = arith.constant 0 : i32
    %c0_i32_1 = arith.constant 0 : i32
    return %c0_i32, %c0_i32_0 : i32, i32
  }
  func.func @transform_2(%arg0: i32) -> (i32, i32) {
    %c0_i32 = arith.constant 0 : i32
    %c0_i32_0 = arith.constant 0 : i32
    %c0_i32_1 = arith.constant 0 : i32
    return %c0_i32, %c0_i32_0 : i32, i32
  }
  func.func @transform_3(%arg0: i32) -> (i32, i32) {
    %c0_i32 = arith.constant 0 : i32
    %c0_i32_0 = arith.constant 0 : i32
    %c0_i32_1 = arith.constant 0 : i32
    return %c0_i32, %c0_i32_0 : i32, i32
  }
  func.func @transform_4(%arg0: i32) -> (i32, i32) {
    %c0_i32 = arith.constant 0 : i32
    %c0_i32_0 = arith.constant 0 : i32
    %c0_i32_1 = arith.constant 0 : i32
    return %c0_i32, %c0_i32_0 : i32, i32
  }
  func.func @transform_5(%arg0: i32) -> (i32, i32) {
    %c0_i32 = arith.constant 0 : i32
    %c0_i32_0 = arith.constant 0 : i32
    %c0_i32_1 = arith.constant 0 : i32
    return %c0_i32, %c0_i32_0 : i32, i32
  }
  func.func @transform_6(%arg0: i32) -> (i32, i32) {
    %c0_i32 = arith.constant 0 : i32
    %c0_i32_0 = arith.constant 0 : i32
    %c0_i32_1 = arith.constant 0 : i32
    return %c0_i32, %c0_i32_0 : i32, i32
  }
  func.func @transform_7(%arg0: i32) -> (i32, i32) {
    %c0_i32 = arith.constant 0 : i32
    %c0_i32_0 = arith.constant 0 : i32
    return %arg0, %c0_i32 : i32, i32
  }
}

</mosaic_0001>

<bundles_post_ra>
// kernel: tpu_custom_call.1
= control target key start
LH: loop header
LB: loop body
LE: loop exit
PB: predicated region body
PF: predicated region fallthrough
CT: control target
= control target key end

     0   :  { %s769_s0 = inlined_call_operand.vmem [shape: f32[16,320], index: 0, kind: input, shape index: {}]   ;;  %s770_s1 = inlined_call_operand.vmem [shape: bf16[320,64], index: 1, kind: input, shape index: {}]   ;;  %s771_s2 = inlined_call_operand.vmem [shape: f32[1,64], index: 2, kind: input, shape index: {}]   ;;  %s772_s3 = inlined_call_operand.vmem [shape: bf16[64,64], index: 3, kind: input, shape index: {}]   ;;  %s773_s4 = inlined_call_operand.vmem [shape: f32[1,64], index: 4, kind: input, shape index: {}]   ;;  %s774_s5 = inlined_call_operand.vmem [shape: bf16[64,128], index: 5, kind: input, shape index: {}]   ;;  %s775_s6 = inlined_call_operand.vmem [shape: f32[1,128], index: 6, kind: input, shape index: {}]   ;;  %s776_s7 = inlined_call_operand.hbm [shape: f32[16,10], index: 7, kind: output, shape index: {}]  }
   0x1   :  { %v546_v0 = vld [vmem:[%s770_s1 + $0x38] sm:$0xff]  ;;  %v545_v3 = vld [vmem:[%s770_s1 + $0x30] sm:$0xff]  ;;  %v544_v6 = vld [vmem:[%s770_s1 + $0x28] sm:$0xff] }
   0x2   :  { %v554_v1 = vld [vmem:[%s770_s1 + $0x78] sm:$0xff]  ;;  %205 = vmatpush.bf16.msra.mxu0 %v546_v0  ;;  %v553_v4 = vld [vmem:[%s770_s1 + $0x70] sm:$0xff]  ;;  %v552_v7 = vld [vmem:[%s770_s1 + $0x68] sm:$0xff] }
   0x3   :  { %v558_v2 = vld [vmem:[%s770_s1 + $0x98] sm:$0xff]  ;;  %219 = vmatpush.bf16.msra.mxu1 %v554_v1  ;;  %v557_v5 = vld [vmem:[%s770_s1 + $0x90] sm:$0xff]  ;;  %v556_v8 = vld [vmem:[%s770_s1 + $0x88] sm:$0xff] }
   0x4   :  { %237 = vmatpush.bf16.msra.mxu2 %v558_v2 }
   0x6   :  { %206 = vmatpush.bf16.msra.mxu0 %v545_v3 }
   0x7   :  { %220 = vmatpush.bf16.msra.mxu1 %v553_v4 }
   0x8   :  { %238 = vmatpush.bf16.msra.mxu2 %v557_v5 }
   0x9   :  { %12 = vsyncpa [#allocation3], 0  ;;  %v543_v9 = vld [vmem:[%s770_s1 + $0x20] sm:$0xff]  ;;  %v30_v12 = vld [vmem:[%s769_s0 + $0x10] sm:$0xff]  ;;  %vm201_vm0 = vcmask 523264   ;;  %vm403_vm5 = vcmask 80896  }
   0xa   :  { %207 = vmatpush.bf16.msra.mxu0 %v544_v6  ;;  %v551_v10 = vld [vmem:[%s770_s1 + $0x60] sm:$0xff]  ;;  %v33_v13 = vld [vmem:[%s769_s0 + $0x28] sm:$0xff]  ;;  %v542_v14 = vld [vmem:[%s770_s1 + $0x18] sm:$0xff]  ;;  %s412_s26 = sshll.u32 %s776_s7, 4  ;;  %s608_s27 = smov 128   ;;  %s413_s26 = int_to_ptr.hbm [resolvable:$true] %s412_s26 }
   0xb   :  { %221 = vmatpush.bf16.msra.mxu1 %v552_v7  ;;  %v555_v11 = vld [vmem:[%s770_s1 + $0x80] sm:$0xff]  ;;  %v550_v15 = vld [vmem:[%s770_s1 + $0x58] sm:$0xff]  ;;  %v36_v16 = vpack.c.bf16 %v33_v13, %v30_v12  ;;  %v541_v17 = vld [vmem:[%s770_s1 + $0x10] sm:$0xff]  ;;  %s609_s28 = smov 8  }
   0xc   :  { %239 = vmatpush.bf16.msra.mxu2 %v556_v8  ;;  %v549_v18 = vld [vmem:[%s770_s1 + $0x50] sm:$0xff]  ;;  %v540_v19 = vld [vmem:[%s770_s1 + $0x8] sm:$0xff]  ;;  %v539_v21 = vld [vmem:[%s770_s1] sm:$0xff] }
   0xd   :  { %v548_v20 = vld [vmem:[%s770_s1 + $0x48] sm:$0xff]  ;;  %v547_v22 = vld [vmem:[%s770_s1 + $0x40] sm:$0xff]  ;;  %v31_v24 = vld [vmem:[%s769_s0 + $0x18] sm:$0xff] }
   0xe   :  { %208 = vmatpush.bf16.msra.mxu0 %v543_v9  ;;  %v28_v23 = vld [vmem:[%s769_s0] sm:$0xff]  ;;  %v29_v25 = vld [vmem:[%s769_s0 + $0x8] sm:$0xff]  ;;  %v562_v29 = vld [vmem:[%s772_s3 + $0x18] sm:$0xff] }
   0xf   :  { %222 = vmatpush.bf16.msra.mxu1 %v551_v10  ;;  %v32_v26 = vld [vmem:[%s769_s0 + $0x20] sm:$0xff]  ;;  %v34_v27 = vpack.c.bf16 %v31_v24, %v28_v23  ;;  %293 = vmatpush.bf16.msra.mxu3 %v562_v29  ;;  %v561_v30 = vld [vmem:[%s772_s3 + $0x10] sm:$0xff]  ;;  %v560_v31 = vld [vmem:[%s772_s3 + $0x8] sm:$0xff] }
  0x10   :  { %240 = vmatpush.bf16.msra.mxu2 %v555_v11  ;;  %v35_v28 = vpack.c.bf16 %v32_v26, %v29_v25  ;;  %v559_v32 = vld [vmem:[%s772_s3] sm:$0xff]  ;;  %v566_v33 = vld [vmem:[%s774_s5 + $0x18] sm:$0xff]  ;;  %v565_v50 = vld [vmem:[%s774_s5 + $0x10] sm:$0xff] }
  0x11   :  { %v570_v34 = vld [vmem:[%s771_s2] ss:$0 sm:$0xff]  ;;  %v564_v51 = vld [vmem:[%s774_s5 + $0x8] sm:$0xff] }
  0x12   :  { %209 = vmatpush.bf16.msra.mxu0 %v542_v14  ;;  %v563_v52 = vld [vmem:[%s774_s5] sm:$0xff] }
  0x13   :  { %223 = vmatpush.bf16.msra.mxu1 %v550_v15  ;;  %504 = vmatmul.msk.bf16.vlgmr.msra.gmra.mxu2 %vm201_vm0, %v36_v16  ;;  %v571_v54 = vld [vmem:[%s773_s4] ss:$0 sm:$0xff]  ;;  %s607_s4 = smov [#allocation2]  }
  0x14   :  { %294 = vmatpush.bf16.msra.mxu3 %v561_v30  ;;  %349 = vmatpush.bf16.msrb.mxu2 %v566_v33  ;;  %v572_v61 = vld [vmem:[%s775_s6] ss:$0 sm:$0xff]  ;;  %s410_s5 = sshll.u32 %s607_s4, 4  ;;  %s411_s5 = int_to_ptr.vmem [resolvable:$true] %s410_s5 }
  0x16   :  { %210 = vmatpush.bf16.msra.mxu0 %v541_v17 }
  0x17   :  { %224 = vmatpush.bf16.msra.mxu1 %v549_v18 }
  0x18   :  { %295 = vmatpush.bf16.msra.mxu3 %v560_v31  ;;  %350 = vmatpush.bf16.msrb.mxu2 %v565_v50 }
  0x1a   :  { %211 = vmatpush.bf16.msra.mxu0 %v540_v19 }
  0x1b   :  { %225 = vmatpush.bf16.msra.mxu1 %v548_v20 }
  0x1c   :  { %296 = vmatpush.bf16.msra.mxu3 %v559_v32  ;;  %351 = vmatpush.bf16.msrb.mxu2 %v564_v51 }
  0x1e   :  { %212 = vmatpush.bf16.msra.mxu0 %v539_v21 }
  0x1f   :  { %226 = vmatpush.bf16.msra.mxu1 %v547_v22 }
  0x20   :  { %352 = vmatpush.bf16.msrb.mxu2 %v563_v52 }
  0x21   :  { %213 = vmatmul.bf16.vlgmr.msra.gmra.mxu0 %v34_v27 }
  0x22   :  { %227 = vmatmul.bf16.vlgmr.msra.gmra.mxu1 %v35_v28 }
  0x96   :  { %v242_v37 = vpop.f32.mrf.mxu2 }
  0x9e   :  { %v214_v35 = vpop.f32.mrf.mxu0  ;;  %v244_v45 = vpop.f32.mrf.mxu2 }
  0x9f   :  { %v228_v36 = vpop.f32.mrf.mxu1  ;;  %v215_v38 = vadd.f32 %v570_v34, %v214_v35 }
  0xa1   :  { %v229_v39 = vadd.f32 %v228_v36, %v215_v38 }
  0xa3   :  { %v243_v43 = vadd.f32 %v242_v37, %v229_v39 }
  0xa5   :  { %v247_v47 = vmax.f32 %v243_v43, 0.0 }
  0xa6   :  { %v216_v40 = vpop.f32.mrf.mxu0 }
  0xa7   :  { %v217_v41 = vadd.f32 %v570_v34, %v216_v40  ;;  %v230_v42 = vpop.f32.mrf.mxu1 }
  0xa9   :  { %v231_v44 = vadd.f32 %v230_v42, %v217_v41 }
  0xab   :  { %v245_v46 = vadd.f32 %v244_v45, %v231_v44 }
  0xad   :  { %v248_v48 = vmax.f32 %v245_v46, 0.0 }
  0xaf   :  { %v249_v49 = vpack.c.bf16 %v248_v48, %v247_v47 }
  0xb1   :  { %521 = vmatmul.msk.bf16.vlgmr.msra.gmra.mxu3 %vm201_vm0, %v249_v49 }
 0x134   :  { %v298_v53 = vpop.f32.mrf.mxu3 }
 0x135   :  { %v299_v55 = vadd.f32 %v571_v54, %v298_v53 }
 0x137   :  { %v303_v58 = vmax.f32 %v299_v55, 0.0 }
 0x13c   :  { %v300_v56 = vpop.f32.mrf.mxu3 }
 0x13d   :  { %v301_v57 = vadd.f32 %v571_v54, %v300_v56 }
 0x13f   :  { %v304_v59 = vmax.f32 %v301_v57, 0.0 }
 0x141   :  { %v305_v60 = vpack.c.bf16 %v304_v59, %v303_v58 }
 0x143   :  { %538 = vmatmul.msk.bf16.vlgmr.msrb.gmra.mxu2 %vm201_vm0, %v305_v60 }
 0x1c6   :  { %v354_v62 = vpop.f32.mrf.mxu2 }
 0x1c7   :  { %v355_v63 = vadd.f32 %v572_v61, %v354_v62 }
 0x1c9   :  { %359 = vmax.xlane.f32.xlu0 %v355_v63 }
 0x1ce   :  { %v356_v0 = vpop.f32.mrf.mxu2 }
 0x1cf   :  { %v357_v1 = vadd.f32 %v572_v61, %v356_v0 }
 0x1d1   :  { %361 = vmax.xlane.f32.xlu0 %v357_v1 }
 0x23c   :  { %v360_v2 = vpop.xlane.xlu0 %359 }
 0x23d   :  { %v363_v3 = vsub.f32 %v355_v63, %v360_v2 }
 0x23f   :  { %v365_v4 = vmul.f32 1.442695, %v363_v3 }
 0x241   :  { %573 = vpow2.f32 %v365_v4 }
 0x244   :  { %v362_v5 = vpop.xlane.xlu0 %361 }
 0x245   :  { %v364_v6 = vsub.f32 %v357_v1, %v362_v5 }
 0x247   :  { %v574_v7 = vpop.eup %573  ;;  %v367_v8 = vmul.f32 1.442695, %v364_v6 }
 0x248   :  { %369 = vadd.xlane.f32.xlu1 %v574_v7 }
 0x249   :  { %575 = vpow2.f32 %v367_v8 }
 0x24f   :  { %v576_v9 = vpop.eup %575 }
 0x250   :  { %371 = vadd.xlane.f32.xlu1 %v576_v9 }
 0x2bb   :  { %v370_v10 = vpop.xlane.xlu1 %369 }
 0x2bc   :  { %577 = vrcp.f32 %v370_v10  ;;  %v384_v15 = vand.u32 2147483648, %v370_v10  ;;  %v382_v17 = vand.u32 2147483647, %v370_v10  ;;  %vm378_vm2 = vweird.f32 %v370_v10 }
 0x2be   :  { %v385_v20 = vor.u32 1.1754944e-38, %v384_v15  ;;  %vm383_vm4 = vcmp.eq.f32.partialorder %v382_v17, 8.507059e+37 }
 0x2c2   :  { %v578_v11 = vpop.eup %577 }
 0x2c3   :  { %v374_v12 = vmul.f32 %v578_v11, %v370_v10  ;;  %v372_v13 = vpop.xlane.xlu1 %371  ;;  %vm379_vm1 = vweird.f32 %v578_v11 }
 0x2c4   :  { %579 = vrcp.f32 %v372_v13  ;;  %vm380_vm3 = vmor %vm378_vm2, %vm379_vm1  ;;  %v398_v26 = vand.u32 2147483648, %v372_v13  ;;  %v396_v28 = vand.u32 2147483647, %v372_v13  ;;  %vm392_vm7 = vweird.f32 %v372_v13 }
 0x2c5   :  { %v375_v14 = vsub.f32 1.0, %v374_v12 }
 0x2c6   :  { %v399_v30 = vor.u32 1.1754944e-38, %v398_v26  ;;  %vm397_vm9 = vcmp.eq.f32.partialorder %v396_v28, 8.507059e+37 }
 0x2c7   :  { %v376_v16 = vmul.f32 %v578_v11, %v375_v14 }
 0x2c9   :  { %v377_v18 = vadd.f32 %v578_v11, %v376_v16 }
 0x2ca   :  { %v580_v19 = vpop.eup %579 }
 0x2cb   :  { %v381_v21 = vsel %vm380_vm3, %v578_v11, %v377_v18  ;;  %v388_v22 = vmul.f32 %v580_v19, %v372_v13  ;;  %vm393_vm6 = vweird.f32 %v580_v19 }
 0x2cc   :  { %v386_v23 = vsel %vm383_vm4, %v385_v20, %v381_v21  ;;  %vm394_vm8 = vmor %vm392_vm7, %vm393_vm6 }
 0x2cd   :  { %v401_v24 = vmul.f32 %v574_v7, %v386_v23  ;;  %v389_v25 = vsub.f32 1.0, %v388_v22 }
 0x2cf   :  { %v390_v27 = vmul.f32 %v580_v19, %v389_v25  ;;  %404 = vst.msk [vmem:[#allocation2] sm:$0xff] %vm403_vm5, %v401_v24 }
 0x2d1   :  { %v391_v29 = vadd.f32 %v580_v19, %v390_v27 }
 0x2d3   :  { %v395_v31 = vsel %vm394_vm8, %v580_v19, %v391_v29 }
 0x2d4   :  { %v400_v32 = vsel %vm397_vm9, %v399_v30, %v395_v31 }
 0x2d5   :  { %v402_v33 = vmul.f32 %v576_v9, %v400_v32 }
 0x2d7   :  { %405 = vst.msk [vmem:[#allocation2 + $0x8] sm:$0xff] %vm403_vm5, %v402_v33 }
 0x2d8   :  { %418 = dma.vmem_to_hbm [thread:$0]  %s411_s5, 256, %s413_s26, [#allocation3], %s608_s27, %s608_s27, %s609_s28  }
 0x2d9   :  { %605 = dma.done.wait [#allocation3], 256  }
 0x2da   :  { %606 = vsyncadd [#allocation3], 4294967040 }
 0x2db   :  { %423 = vsyncpa [#allocation3], 1 }

</bundles_post_ra>
